<compile_context>
chip_gen: v7x
topology: tpu7x:2x2x1
jax: 0.10.0
libtpu: 0.0.40
codegen_flags: <defaults>
</compile_context>

<pallas_src>
import functools
import math

import jax
import jax.numpy as jnp
import numpy as np
from jax.experimental import pallas as pl
from jax.experimental.pallas import tpu as pltpu

_LANES = 128  # TPU vreg lane width


def _pe_kernel(consts_ref, o_ref):
    """o_ref: (bn, LCM) f32 tile of the flat table slab.

    Slab row g covers positions [g*P, (g+1)*P); lane j holds channel
    j % d_model of position g*P + j // d_model.  consts_ref is (2, LCM):
      row 0: P * inv_freq[ch]                                  (scaled freq)
      row 1: (j // d_model) * inv_freq[ch] + phase[ch]          (folded @ f64;
                                                        phase = pi/2 on odd ch)
    """
    bn, lanes = o_ref.shape
    grp = (pl.program_id(0) * bn
           + jax.lax.broadcasted_iota(jnp.int32, (bn, lanes), 0)
           ).astype(jnp.float32)
    scaled_freq = consts_ref[0:1, :]     # (1, LCM), broadcast over sublanes
    folded_phase = consts_ref[1:2, :]    # (1, LCM)
    o_ref[...] = jnp.sin(grp * scaled_freq + folded_phase)


def _default_block_cap_bytes():
    """Output-block byte budget: ~4 MiB on v5e/v6e (128 MiB VMEM), ~2 MiB on
    v7x (64 MiB VMEM) or when the chip cannot be identified."""
    try:
        vmem = getattr(pltpu.get_tpu_info(), "vmem_capacity_bytes", 0) or 0
    except Exception:
        vmem = 0
    return (4 << 20) if vmem >= (100 << 20) else (2 << 20)


@functools.lru_cache(maxsize=None)
def _pe_table(max_seq_len, d_model, block_cap_bytes=None):
    """(max_seq_len, d_model) float32 sinusoidal table, built once per shape."""
    assert d_model % 2 == 0, "d_model must be even (as in the PyTorch module)"
    lcm = math.lcm(d_model, _LANES)
    p = lcm // d_model                       # positions packed per slab row
    ng = pl.cdiv(max_seq_len, p)             # total slab rows

    # --- per-lane constants, folded once at float64 on the host -------------
    j = np.arange(lcm, dtype=np.int64)
    ch = j % d_model
    local_pos = (j // d_model).astype(np.float64)
    # Each channel uses its own index in the exponent (PyTorch module quirk).
    inv_freq = np.power(10000.0, -2.0 * ch.astype(np.float64) / float(d_model))
    phase = (ch % 2).astype(np.float64) * (np.pi / 2.0)  # sin(x+pi/2) == cos(x)
    consts = np.stack([
        float(p) * inv_freq,
        local_pos * inv_freq + phase,
    ]).astype(np.float32)                                 # (2, lcm)

    # --- tiling: exact (unpadded) output, biggest lane-dense block under cap
    if block_cap_bytes is None:
        block_cap_bytes = _default_block_cap_bytes()
    row_bytes = lcm * 4
    bn = max(8, (block_cap_bytes // row_bytes) // 8 * 8)
    if ng <= bn:
        bn = ng            # single block == full array (bypasses (8,128) rule)
    else:
        n_blocks = pl.cdiv(ng, bn)
        if n_blocks % 2 == 1:   # prefer even grids so v7x's 2 TCs both work
            bn_alt = 8 * pl.cdiv(pl.cdiv(ng, n_blocks + 1), 8)
            if 0 < bn_alt <= bn and pl.cdiv(ng, bn_alt) % 2 == 0:
                bn = bn_alt
    n_blocks = pl.cdiv(ng, bn)

    slab = pl.pallas_call(
        _pe_kernel,
        out_shape=jax.ShapeDtypeStruct((ng, lcm), jnp.float32),
        grid=(n_blocks,),
        in_specs=[pl.BlockSpec((2, lcm), lambda i: (0, 0))],
        out_specs=pl.BlockSpec((bn, lcm), lambda i: (i, 0)),
        compiler_params=pltpu.CompilerParams(
            dimension_semantics=("parallel",)),
    )(jnp.asarray(consts))

    pe = slab.reshape(ng * p, d_model)      # row-major flatten keeps (pos, ch)
    if ng * p != max_seq_len:
        pe = pe[:max_seq_len]               # at most p-1 tail positions trimmed
    return pe


def position_embedding_sine(x, d_model, max_seq_len=200):
    """Pallas equivalent of PositionEmbeddingSine.forward.

    x: (B, S, ...) -- only x.shape[1] (seq_len) is used, exactly as in the
       PyTorch module. Returns (1, seq_len, d_model) float32.
    """
    seq_len = int(x.shape[1])
    assert seq_len <= max_seq_len
    pe = _pe_table(int(max_seq_len), int(d_model))   # cached across calls
    return pe[None, :seq_len, :]


def _reference_pe(seq_len, d_model):
    """Direct NumPy transliteration of the PyTorch __init__ loops."""
    pe = np.zeros((seq_len, d_model), dtype=np.float32)
    for pos in range(seq_len):
        for i in range(0, d_model, 2):
            pe[pos, i] = math.sin(pos / 10000 ** (2 * i / d_model))
            pe[pos, i + 1] = math.cos(pos / 10000 ** (2 * (i + 1) / d_model))
    return pe[None]  # (1, seq_len, d_model)


def _reference_table(seq_len, d_model):
    """Vectorized float64 version of the same (quirky) formula, full table."""
    pos = np.arange(seq_len, dtype=np.float64)[:, None]
    ch = np.arange(d_model)[None, :]
    ang = pos * np.power(10000.0, -2.0 * ch.astype(np.float64) / float(d_model))
    return np.where(ch % 2 == 0, np.sin(ang), np.cos(ang)).astype(np.float32)


if __name__ == "__main__":
    key = jax.random.PRNGKey(0)
    B, S, D = 2, 8, 32  # batch=2, seq=8, d_model=32
    x = jax.random.normal(key, (B, S, D), dtype=jnp.float32)

    out = jax.block_until_ready(position_embedding_sine(x, d_model=D))
    ref = _reference_pe(S, D)
    assert out.shape == (1, S, D), out.shape
    np.testing.assert_allclose(np.asarray(out), ref, rtol=1e-5, atol=1e-5)

    # Second call must hit the table cache and still be correct.
    out_again = jax.block_until_ready(position_embedding_sine(x, d_model=D))
    np.testing.assert_allclose(np.asarray(out_again), ref, rtol=1e-5, atol=1e-5)

    # d_model that does not divide 128 -> grouped lane-dense slab (LCM=384).
    D2 = 192
    out2 = jax.block_until_ready(position_embedding_sine(x, d_model=D2))
    np.testing.assert_allclose(np.asarray(out2), _reference_pe(S, D2),
                               rtol=1e-5, atol=1e-5)

    # Multi-block grid with a partial (masked) last block, forced via a tiny
    # block cap: 18 slab rows in 8-row blocks -> grid=(3,), last block 2 rows.
    tbl = jax.block_until_ready(
        _pe_table(72, 32, block_cap_bytes=8 * _LANES * 4))
    np.testing.assert_allclose(np.asarray(tbl), _reference_table(72, 32),
                               rtol=1e-4, atol=1e-4)

    print("KERNEL_OK")
</pallas_src>

<mosaic_0001>
module attributes {stable_mosaic.version = 11 : i64} {
  func.func @_pe_kernel(%arg0: i32, %arg1: memref<2x128xf32, #tpu.memory_space<vmem>>, %arg2: memref<50x128xf32, #tpu.memory_space<vmem>>) attributes {dimension_semantics = [#tpu.dimension_semantics<parallel>], iteration_bounds = array<i64: 1>, scalar_prefetch = 0 : i64, scratch_operands = 0 : i64, tpu.core_type = #tpu.core_type<tc>, window_params = [{pipeline_mode = #tpu.pipeline_mode<synchronous>, transform_indices = @transform_0, window_bounds = array<i64: 2, 128>}, {transform_indices = @transform_1, window_bounds = array<i64: 50, 128>}]} {
    %c50_i32 = arith.constant 50 : i32
    %0 = arith.muli %arg0, %c50_i32 : i32
    %1 = tpu.iota {dimensions = array<i32: 0>} : vector<50x128xi32>
    %2 = vector.broadcast %0 : i32 to vector<50x128xi32>
    %3 = arith.addi %2, %1 : vector<50x128xi32>
    %4 = arith.sitofp %3 : vector<50x128xi32> to vector<50x128xf32>
    %c0 = arith.constant 0 : index
    %c0_0 = arith.constant 0 : index
    %5 = vector.load %arg1[%c0, %c0_0] : memref<2x128xf32, #tpu.memory_space<vmem>>, vector<1x128xf32>
    %c1 = arith.constant 1 : index
    %c0_1 = arith.constant 0 : index
    %6 = vector.load %arg1[%c1, %c0_1] : memref<2x128xf32, #tpu.memory_space<vmem>>, vector<1x128xf32>
    %7 = vector.broadcast %5 : vector<1x128xf32> to vector<50x128xf32>
    %8 = arith.mulf %4, %7 : vector<50x128xf32>
    %9 = vector.broadcast %6 : vector<1x128xf32> to vector<50x128xf32>
    %10 = arith.addf %8, %9 : vector<50x128xf32>
    %11 = math.sin %10 : vector<50x128xf32>
    %c0_2 = arith.constant 0 : index
    %c0_3 = arith.constant 0 : index
    %12 = vector.load %arg2[%c0_2, %c0_3] : memref<50x128xf32, #tpu.memory_space<vmem>>, vector<50x128xf32>
    tpu.vector_store %arg2[%c0_2, %c0_3], %11 {strides = array<i32>} : memref<50x128xf32, #tpu.memory_space<vmem>>, vector<50x128xf32>,
    return
  }
  func.func @transform_0(%arg0: i32) -> (i32, i32) {
    %c0_i32 = arith.constant 0 : i32
    %c0_i32_0 = arith.constant 0 : i32
    %c0_i32_1 = arith.constant 0 : i32
    return %c0_i32, %c0_i32_0 : i32, i32
  }
  func.func @transform_1(%arg0: i32) -> (i32, i32) {
    %c0_i32 = arith.constant 0 : i32
    %c0_i32_0 = arith.constant 0 : i32
    return %arg0, %c0_i32 : i32, i32
  }
}

</mosaic_0001>

<bundles_post_ra>
// kernel: tpu_custom_call.1
= control target key start
LH: loop header
LB: loop body
LE: loop exit
PB: predicated region body
PF: predicated region fallthrough
CT: control target
= control target key end

     0   :  { %6 = vsyncpa [#allocation3], 0  ;;  %s1550_s0 = inlined_call_operand.hbm [shape: f32[2,128], index: 0, kind: input, shape index: {}]   ;;  %s1551_s1 = inlined_call_operand.hbm [shape: f32[50,128], index: 1, kind: output, shape index: {}]  }
   0x1   :  { %7 = vsyncpa [#allocation4], 0  ;;  %s965_s6 = smov [#allocation2]   ;;  %s917_s10 = scalar_lea.hbm %s1550_s0, 32 }
   0x2   :  { %s14_s7 = sshll.u32 %s965_s6, 4  ;;  %p918_p0 = scmp.ne.s32.totalorder %s1550_s0, %s917_s10  ;;  %s15_s7 = int_to_ptr.vmem [resolvable:$true] %s14_s7 }
   0x3   :  { %p921_p1 = scmp.lt.u32.totalorder %s917_s10, %s1550_s0 }
   0x5   :  { %p923_p2 = pnand %p921_p1, %p918_p0 }
   0x7   :  { %926 = shalt.err (!%p923_p2)
}
   0x8   :  { %s927_s15 = scalar_lea.vmem %s15_s7, 32  ;;  %p932_p4 = scmp.lt.s32.totalorder %s15_s7, %s15_s7 }
   0x9   :  { %p928_p3 = scmp.ne.s32.totalorder %s15_s7, %s927_s15  ;;  %p933_p5 = scmp.lt.s32.totalorder %s927_s15, %s927_s15 }
   0xb   :  { %p934_p6 = por %p933_p5, %p932_p4 }
   0xd   :  { %p935_p7 = pnand %p934_p6, %p928_p3 }
   0xf   :  { %938 = shalt.err (!%p935_p7)
}
  0x10   :  { %17 = dma.hbm_to_vmem [thread:$0]  %s1550_s0, 32, %s15_s7, [#allocation3]  }
  0x11   :  { %961 = dma.done.wait [#allocation3], 32  }
  0x12   :  { %962 = vsyncadd [#allocation3], 4294967264  ;;  %v22_v0 = vlaneseq  ;;  %v821_v13 = vld [vmem:[#allocation2] ss:$0 sm:$0xff]  ;;  %v822_v14 = vld [vmem:[#allocation2 + $0x1] ss:$0 sm:$0xff] }
  0x13   :  { %v966_v59 = vmov 683565275   ;;  %v967_v61 = vmov 2475754826   ;;  %v968_v63 = vmov 2131351028  }
  0x14   :  { %v23_v1 = vshrl.u32 %v22_v0, 7  ;;  %s972_s0 = smov [#allocation5]  }
  0x15   :  { %s809_s18 = sshll.u32 %s972_s0, 4  ;;  %s810_s18 = int_to_ptr.vmem [resolvable:$true] %s809_s18 }
  0x16   :  { %v24_v2 = vadd.s32 8, %v23_v1  ;;  %v25_v3 = vadd.s32 16, %v23_v1  ;;  %v27_v4 = vadd.s32 32, %v23_v1  ;;  %v28_v5 = vadd.s32 40, %v23_v1  ;;  %s939_s19 = scalar_lea.vmem %s810_s18, 896  ;;  %p944_p9 = scmp.lt.s32.totalorder %s810_s18, %s810_s18 }
  0x17   :  { %v29_v6 = vadd.s32 48, %v23_v1  ;;  %v38_v7 = vcvt.s32.f32 %v23_v1  ;;  %v26_v18 = vadd.s32 24, %v23_v1  ;;  %v969_v1 = vmov 2102212464   ;;  %p940_p8 = scmp.ne.s32.totalorder %s810_s18, %s939_s19  ;;  %p945_p10 = scmp.lt.s32.totalorder %s939_s19, %s939_s19 }
  0x18   :  { %v39_v8 = vcvt.s32.f32 %v24_v2  ;;  %v40_v9 = vcvt.s32.f32 %v25_v3  ;;  %v42_v10 = vcvt.s32.f32 %v27_v4  ;;  %v43_v11 = vcvt.s32.f32 %v28_v5 }
  0x19   :  { %v44_v12 = vcvt.s32.f32 %v29_v6  ;;  %v51_v15 = vmul.f32 %v821_v13, %v38_v7  ;;  %v41_v30 = vcvt.s32.f32 %v26_v18  ;;  %v970_v3 = vmov 920167782   ;;  %p946_p11 = por %p945_p10, %p944_p9 }
  0x1a   :  { %v52_v16 = vmul.f32 %v821_v13, %v39_v8  ;;  %v53_v17 = vmul.f32 %v821_v13, %v40_v9  ;;  %v55_v19 = vmul.f32 %v821_v13, %v42_v10  ;;  %v56_v20 = vmul.f32 %v821_v13, %v43_v11 }
  0x1b   :  { %v57_v21 = vmul.f32 %v821_v13, %v44_v12  ;;  %v997_v22 = vadd.f32 %v822_v14, %v51_v15  ;;  %v54_v39 = vmul.f32 %v821_v13, %v41_v30  ;;  %v971_v11 = vmov 1326507024   ;;  %p947_p12 = pnand %p946_p11, %p940_p8 }
  0x1c   :  { %v999_v23 = vadd.f32 %v822_v14, %v52_v16  ;;  %v1001_v24 = vadd.f32 %v822_v14, %v53_v17  ;;  %v1003_v25 = vadd.f32 %v822_v14, %v55_v19  ;;  %v1005_v26 = vadd.f32 %v822_v14, %v56_v20 }
  0x1d   :  { %v1007_v27 = vadd.f32 %v822_v14, %v57_v21  ;;  %v69_v28 = vand.u32 2147483647, %v997_v22  ;;  %v72_v29 = vand.u32 2139095040, %v997_v22  ;;  %v1019_v48 = vadd.f32 %v822_v14, %v54_v39 }
  0x1e   :  { %v173_v31 = vand.u32 2147483647, %v999_v23  ;;  %v176_v32 = vand.u32 2139095040, %v999_v23  ;;  %v280_v37 = vand.u32 2139095040, %v1001_v24  ;;  %v277_v46 = vand.u32 2147483647, %v1001_v24 }
  0x1f   :  { %v73_v33 = vshrl.u32 %v72_v29, 23  ;;  %v76_v34 = vand.u32 8388607, %v69_v28  ;;  %vm71_vm12 = vcmp.lt.s32.totalorder %v997_v22, 0  ;;  %vm1114_vm14 = vcmp.le.f32.partialorder %v69_v28, 0.7853982 }
  0x20   :  { %v177_v35 = vshrl.u32 %v176_v32, 23  ;;  %v180_v36 = vand.u32 8388607, %v173_v31  ;;  %v281_v41 = vshrl.u32 %v280_v37, 23  ;;  %v1027_v56 = vand.u32 8388607, %v277_v46 }
  0x21   :  { %v823_v38 = vadd.s32 4294967169, %v73_v33  ;;  %v77_v42 = vor.u32 8388608, %v76_v34 }
  0x22   :  { %v827_v40 = vadd.s32 4294967169, %v177_v35  ;;  %v181_v44 = vor.u32 8388608, %v180_v36  ;;  %v831_v47 = vadd.s32 4294967169, %v281_v41 }
  0x23   :  { %v79_v43 = vadd.s32 1, %v823_v38  ;;  %v1021_v52 = vshll.u32 %v77_v42, 8 }
  0x24   :  { %v183_v45 = vadd.s32 1, %v827_v40  ;;  %v1023_v55 = vshll.u32 %v181_v44, 8  ;;  %v1029_v57 = vadd.s32 1, %v831_v47 }
  0x25   :  { %vm80_vm0 = vcmp.gt.s32.totalorder %v79_v43, 0 }
  0x26   :  { %v81_v49 = vsel %vm80_vm0, %v79_v43, 0  ;;  %vm184_vm1 = vcmp.gt.s32.totalorder %v183_v45, 0  ;;  %vm288_vm6 = vcmp.gt.s32.totalorder %v1029_v57, 0 }
  0x27   :  { %v82_v50 = vshrl.u32 %v81_v49, 5  ;;  %v83_v51 = vand.u32 31, %v81_v49  ;;  %v185_v53 = vsel %vm184_vm1, %v183_v45, 0 }
  0x28   :  { %v187_v54 = vand.u32 31, %v185_v53  ;;  %v1036_v5 = vshrl.u32 %v185_v53, 5 }
  0x29   :  { %v84_v58 = vsub.s32 32, %v83_v51  ;;  %v86_v60 = vshll.u32 %v966_v59, %v83_v51  ;;  %v89_v62 = vshll.u32 %v967_v61, %v83_v51  ;;  %v92_v0 = vshll.u32 %v968_v63, %v83_v51 }
  0x2a   :  { %v95_v2 = vshll.u32 %v969_v1, %v83_v51  ;;  %v98_v4 = vshll.u32 %v970_v3, %v83_v51  ;;  %vm101_vm2 = vcmp.lt.s32.totalorder %v82_v50, 1  ;;  %vm102_vm3 = vcmp.lt.s32.totalorder %v82_v50, 2 }
  0x2b   :  { %v85_v6 = vshrl.u32 %v966_v59, %v84_v58  ;;  %v87_v7 = vshrl.u32 %v967_v61, %v84_v58  ;;  %v90_v8 = vshrl.u32 %v968_v63, %v84_v58  ;;  %v93_v9 = vshrl.u32 %v969_v1, %v84_v58 }
  0x2c   :  { %v96_v10 = vshrl.u32 %v970_v3, %v84_v58  ;;  %v99_v12 = vshrl.u32 %v971_v11, %v84_v58  ;;  %vm104_vm4 = vcmp.lt.s32.totalorder %v82_v50, 4  ;;  %v188_v16 = vsub.s32 32, %v187_v54 }
  0x2d   :  { %v88_v13 = vor.u32 %v87_v7, %v86_v60  ;;  %v91_v14 = vor.u32 %v90_v8, %v89_v62  ;;  %v94_v15 = vor.u32 %v93_v9, %v92_v0  ;;  %vm103_vm5 = vcmp.lt.s32.totalorder %v82_v50, 3 }
  0x2e   :  { %v97_v17 = vor.u32 %v96_v10, %v95_v2  ;;  %v100_v18 = vor.u32 %v99_v12, %v98_v4  ;;  %v190_v19 = vshll.u32 %v966_v59, %v187_v54  ;;  %v193_v35 = vshll.u32 %v967_v61, %v187_v54 }
  0x2f   :  { %v105_v20 = vsel %vm101_vm2, %v85_v6, %v88_v13  ;;  %v106_v21 = vsel %vm104_vm4, %v94_v15, 2102212464  ;;  %v109_v29 = vsel %vm101_vm2, %v88_v13, %v91_v14  ;;  %v113_v30 = vsel %vm101_vm2, %v91_v14, %v94_v15 }
  0x30   :  { %v107_v32 = vsel %vm103_vm5, %v91_v14, %v106_v21  ;;  %v110_v33 = vsel %vm104_vm4, %v97_v17, 920167782  ;;  %v114_v34 = vsel %vm104_vm4, %v100_v18, 1326507024  ;;  %v189_v38 = vshrl.u32 %v966_v59, %v188_v16 }
  0x31   :  { %v111_v36 = vsel %vm103_vm5, %v94_v15, %v110_v33  ;;  %v115_v37 = vsel %vm103_vm5, %v97_v17, %v114_v34  ;;  %v191_v39 = vshrl.u32 %v967_v61, %v188_v16  ;;  %v108_v40 = vsel %vm102_vm3, %v105_v20, %v107_v32 }
  0x32   :  { %v112_v41 = vsel %vm102_vm3, %v109_v29, %v111_v36  ;;  %v116_v42 = vsel %vm102_vm3, %v113_v30, %v115_v37  ;;  %v194_v43 = vshrl.u32 %v968_v63, %v188_v16  ;;  %v196_v58 = vshll.u32 %v968_v63, %v187_v54 }
  0x33   :  { %v1057_v44 = vmul.u32.u64.low %v1021_v52, %v116_v42  ;;  %v1058_v45 = vmul.u32.u64.high %v1021_v52, %v116_v42, %v1057_v44  ;;  %v1061_v47 = vmul.u32.u64.low %v1021_v52, %v112_v41  ;;  %v1062_v49 = vmul.u32.u64.high %v1021_v52, %v112_v41, %v1061_v47 }
  0x34   :  { %v192_v51 = vor.u32 %v191_v39, %v190_v19  ;;  %v195_v53 = vor.u32 %v194_v43, %v193_v35  ;;  %v197_v60 = vshrl.u32 %v969_v1, %v188_v16  ;;  %v199_v50 = vshll.u32 %v969_v1, %v187_v54 }
  0x35   :  { %v200_v62 = vshrl.u32 %v970_v3, %v188_v16  ;;  %v202_v0 = vshll.u32 %v970_v3, %v187_v54  ;;  %v203_v2 = vshrl.u32 %v971_v11, %v188_v16  ;;  %v124_v4 = vmul.u32 %v1021_v52, %v108_v40 }
  0x36   :  { %v198_v6 = vor.u32 %v197_v60, %v196_v58  ;;  %vm205_vm7 = vcmp.lt.s32.totalorder %v1036_v5, 1  ;;  %vm206_vm8 = vcmp.lt.s32.totalorder %v1036_v5, 2  ;;  %vm126_vm9 = vc.u32 %v1058_v45, %v1061_v47 }
  0x37   :  { %v127_v7 = vadd.s32 1, %v1062_v49  ;;  %v201_v8 = vor.u32 %v200_v62, %v199_v50  ;;  %vm207_vm10 = vcmp.lt.s32.totalorder %v1036_v5, 3  ;;  %v204_v9 = vor.u32 %v203_v2, %v202_v0 }
  0x38   :  { %vm208_vm11 = vcmp.lt.s32.totalorder %v1036_v5, 4  ;;  %v209_v54 = vsel %vm205_vm7, %v189_v38, %v192_v51  ;;  %v213_v10 = vsel %vm205_vm7, %v192_v51, %v195_v53  ;;  %v217_v14 = vsel %vm205_vm7, %v195_v53, %v198_v6 }
  0x39   :  { %v128_v52 = vsel %vm126_vm9, %v127_v7, %v1062_v49  ;;  %v210_v12 = vsel %vm208_vm11, %v198_v6, 2102212464  ;;  %v214_v13 = vsel %vm208_vm11, %v201_v8, 920167782  ;;  %v218_v18 = vsel %vm208_vm11, %v204_v9, 1326507024 }
  0x3a   :  { %v129_v15 = vadd.s32 %v128_v52, %v124_v4  ;;  %v211_v16 = vsel %vm207_vm10, %v195_v53, %v210_v12  ;;  %v215_v17 = vsel %vm207_vm10, %v198_v6, %v214_v13  ;;  %v219_v21 = vsel %vm207_vm10, %v201_v8, %v218_v18 }
  0x3b   :  { %v212_v19 = vsel %vm206_vm8, %v209_v54, %v211_v16  ;;  %v216_v20 = vsel %vm206_vm8, %v213_v10, %v215_v17  ;;  %v289_v29 = vsel %vm288_vm6, %v1029_v57, 0  ;;  %v220_v32 = vsel %vm206_vm8, %v217_v14, %v219_v21 }
  0x3c   :  { %v130_v30 = vadd.s32 536870912, %v129_v15  ;;  %v1090_v33 = vmul.u32.u64.low %v1023_v55, %v216_v20  ;;  %v1091_v34 = vmul.u32.u64.high %v1023_v55, %v216_v20, %v1090_v33  ;;  %v285_v37 = vor.u32 8388608, %v1027_v56 }
  0x3d   :  { %v1095_v35 = vmul.u32.u64.low %v1023_v55, %v220_v32  ;;  %v1096_v36 = vmul.u32.u64.high %v1023_v55, %v220_v32, %v1095_v35  ;;  %v381_v38 = vand.u32 2147483647, %v1019_v48  ;;  %v291_v40 = vand.u32 31, %v289_v29 }
  0x3e   :  { %v131_v39 = vshrl.u32 %v130_v30, 30  ;;  %v228_v57 = vmul.u32 %v1023_v55, %v212_v19  ;;  %v231_v41 = vadd.s32 1, %v1091_v34  ;;  %v1105_v43 = vshll.u32 %v285_v37, 8 }
  0x3f   :  { %v292_v42 = vsub.s32 32, %v291_v40  ;;  %vm230_vm13 = vc.u32 %v1096_v36, %v1090_v33  ;;  %v384_v44 = vand.u32 2139095040, %v1019_v48  ;;  %v1110_v56 = vand.u32 8388607, %v381_v38 }
  0x40   :  { %v132_v5 = vshll.u32 %v131_v39, 30  ;;  %v155_v51 = vsub.s32 4, %v131_v39  ;;  %v232_v53 = vsel %vm230_vm13, %v231_v41, %v1091_v34  ;;  %v290_v58 = vshrl.u32 %v289_v29, 5 }
  0x41   :  { %v233_v60 = vadd.s32 %v232_v53, %v228_v57  ;;  %v294_v50 = vshll.u32 %v966_v59, %v291_v40  ;;  %v295_v62 = vshrl.u32 %v967_v61, %v292_v42  ;;  %v297_v0 = vshll.u32 %v967_v61, %v291_v40 }
  0x42   :  { %v1118_v49 = vsub.s32 %v129_v15, %v132_v5  ;;  %v298_v28 = vshrl.u32 %v968_v63, %v292_v42  ;;  %v300_v4 = vshll.u32 %v968_v63, %v291_v40  ;;  %v301_v6 = vshrl.u32 %v969_v1, %v292_v42 }
  0x43   :  { %v125_v7 = vadd.s32 %v1061_v47, %v1058_v45  ;;  %v234_v8 = vadd.s32 536870912, %v233_v60  ;;  %v303_v9 = vshll.u32 %v969_v1, %v291_v40  ;;  %v385_v54 = vshrl.u32 %v384_v44, 23 }
  0x44   :  { %v135_v2 = vsub.s32 0, %v1118_v49  ;;  %v156_v52 = vsel %vm71_vm12, %v155_v51, %v131_v39  ;;  %v304_v12 = vshrl.u32 %v970_v3, %v292_v42  ;;  %vm312_vm15 = vcmp.lt.s32.totalorder %v290_v58, 4 }
  0x45   :  { %v1135_v13 = vshrl.u32 %v234_v8, 30  ;;  %v293_v14 = vshrl.u32 %v966_v59, %v292_v42  ;;  %v306_v15 = vshll.u32 %v970_v3, %v291_v40  ;;  %v307_v45 = vshrl.u32 %v971_v11, %v292_v42 }
  0x46   :  { %v824_v10 = vmin.u32 %v135_v2, %v1118_v49  ;;  %v296_v16 = vor.u32 %v295_v62, %v294_v50  ;;  %v299_v17 = vor.u32 %v298_v28, %v297_v0  ;;  %v302_v18 = vor.u32 %v301_v6, %v300_v4 }
  0x47   :  { %v236_v19 = vshll.u32 %v1135_v13, 30  ;;  %v305_v20 = vor.u32 %v304_v12, %v303_v9  ;;  %vm309_vm0 = vcmp.lt.s32.totalorder %v290_v58, 1  ;;  %vm311_vm1 = vcmp.lt.s32.totalorder %v290_v58, 3 }
  0x48   :  { %v137_v47 = vclz %v824_v10  ;;  %v308_v29 = vor.u32 %v307_v45, %v306_v15  ;;  %v314_v30 = vsel %vm312_vm15, %v302_v18, 2102212464  ;;  %v835_v32 = vadd.s32 4294967169, %v385_v54 }
  0x49   :  { %v158_v34 = vsel %vm1114_vm14, 0, %v156_v52  ;;  %v1144_v35 = vsub.s32 %v233_v60, %v236_v19  ;;  %vm310_vm2 = vcmp.lt.s32.totalorder %v290_v58, 2  ;;  %v318_v37 = vsel %vm312_vm15, %v305_v20, 920167782 }
  0x4a   :  { %v825_v21 = vadd.s32 4294967294, %v137_v47  ;;  %v313_v39 = vsel %vm309_vm0, %v293_v14, %v296_v16  ;;  %v317_v40 = vsel %vm309_vm0, %v296_v16, %v299_v17  ;;  %v319_v57 = vsel %vm311_vm1, %v302_v18, %v318_v37 }
  0x4b   :  { %v239_v41 = vsub.s32 0, %v1144_v35  ;;  %v315_v42 = vsel %vm311_vm1, %v299_v17, %v314_v30  ;;  %v321_v44 = vsel %vm309_vm0, %v299_v17, %v302_v18  ;;  %v322_v50 = vsel %vm312_vm15, %v308_v29, 1326507024 }
  0x4c   :  { %vm826_vm3 = vcmp.lt.s32.totalorder %v825_v21, 0  ;;  %vm175_vm4 = vcmp.lt.s32.totalorder %v999_v23, 0  ;;  %v320_v0 = vsel %vm310_vm2, %v317_v40, %v319_v57  ;;  %v323_v2 = vsel %vm311_vm1, %v305_v20, %v322_v50 }
  0x4d   :  { %v140_v5 = vsel %vm826_vm3, 0, %v825_v21  ;;  %v828_v62 = vmin.u32 %v239_v41, %v1144_v35  ;;  %v324_v6 = vsel %vm310_vm2, %v321_v44, %v323_v2  ;;  %v391_v8 = vadd.s32 1, %v835_v32 }
  0x4e   :  { %v141_v51 = vsub.s32 32, %v140_v5  ;;  %v142_v53 = vshll.u32 %v1118_v49, %v140_v5  ;;  %v145_v60 = vsub.s32 4294967266, %v140_v5  ;;  %v162_v9 = vadd.s32 3, %v158_v34 }
  0x4f   :  { %v241_v54 = vclz %v828_v62  ;;  %v316_v49 = vsel %vm310_vm2, %v313_v39, %v315_v42  ;;  %v389_v10 = vor.u32 8388608, %v1110_v56  ;;  %vm392_vm5 = vcmp.gt.s32.totalorder %v391_v8, 0 }
  0x50   :  { %v143_v28 = vshrl.u32 %v125_v7, %v141_v51  ;;  %v146_v4 = vadd.s32 127, %v145_v60  ;;  %v1163_v14 = vmul.u32.u64.low %v1105_v43, %v324_v6  ;;  %v1164_v15 = vmul.u32.u64.high %v1105_v43, %v324_v6, %v1163_v14 }
  0x51   :  { %v829_v45 = vadd.s32 4294967294, %v241_v54  ;;  %v1167_v47 = vmul.u32.u64.low %v1105_v43, %v320_v0  ;;  %v1168_v7 = vmul.u32.u64.high %v1105_v43, %v320_v0, %v1167_v47  ;;  %v259_v58 = vsub.s32 4, %v1135_v13 }
  0x52   :  { %v144_v52 = vor.u32 %v143_v28, %v142_v53  ;;  %v147_v12 = vshll.u32 %v146_v4, 23  ;;  %v393_v18 = vsel %vm392_vm5, %v391_v8, 0  ;;  %v1172_v19 = vand.u32 3, %v162_v9 }
  0x53   :  { %v229_v20 = vadd.s32 %v1090_v33, %v1096_v36  ;;  %vm830_vm6 = vcmp.lt.s32.totalorder %v829_v45, 0  ;;  %v395_v21 = vand.u32 31, %v393_v18  ;;  %v332_v32 = vmul.u32 %v1105_v43, %v316_v49 }
  0x54   :  { %v148_v16 = vor.u32 4788187, %v147_v12  ;;  %v151_v17 = vcvt.s32.f32 %v144_v52  ;;  %v244_v30 = vsel %vm830_vm6, 0, %v829_v45  ;;  %vm334_vm7 = vc.u32 %v1164_v15, %v1167_v47 }
  0x55   :  { %vm1181_vm8 = vcmp.le.f32.partialorder %v173_v31, 0.7853982  ;;  %v245_v37 = vsub.s32 32, %v244_v30  ;;  %v246_v39 = vshll.u32 %v1144_v35, %v244_v30  ;;  %v249_v40 = vsub.s32 4294967266, %v244_v30 }
  0x56   :  { %v149_v29 = vand.u32 2147483647, %v148_v16  ;;  %v335_v33 = vadd.s32 1, %v1168_v7  ;;  %v260_v43 = vsel %vm175_vm4, %v259_v58, %v1135_v13  ;;  %v1190_v57 = vshrl.u32 %v393_v18, 5 }
  0x57   :  { %v396_v5 = vsub.s32 32, %v395_v21  ;;  %v247_v41 = vshrl.u32 %v229_v20, %v245_v37  ;;  %v250_v42 = vadd.s32 127, %v249_v40  ;;  %v398_v44 = vshll.u32 %v966_v59, %v395_v21 }
  0x58   :  { %v152_v36 = vmul.f32 %v151_v17, %v149_v29  ;;  %v336_v31 = vsel %vm334_vm7, %v335_v33, %v1168_v7  ;;  %v401_v60 = vshll.u32 %v967_v61, %v395_v21  ;;  %v404_v13 = vshll.u32 %v968_v63, %v395_v21 }
  0x59   :  { %v337_v53 = vadd.s32 %v336_v31, %v332_v32  ;;  %v399_v35 = vshrl.u32 %v967_v61, %v396_v5  ;;  %v248_v50 = vor.u32 %v247_v41, %v246_v39  ;;  %v251_v62 = vshll.u32 %v250_v42, 23 }
  0x5a   :  { %v153_v51 = vxor.u32 2147483648, %v152_v36  ;;  %v402_v0 = vshrl.u32 %v968_v63, %v396_v5  ;;  %v405_v4 = vshrl.u32 %v969_v1, %v396_v5  ;;  %v407_v6 = vshll.u32 %v969_v1, %v395_v21 }
  0x5b   :  { %v338_v28 = vadd.s32 536870912, %v337_v53  ;;  %v252_v9 = vor.u32 4788187, %v251_v62  ;;  %v255_v54 = vcvt.s32.f32 %v248_v50  ;;  %v400_v49 = vor.u32 %v399_v35, %v398_v44 }
  0x5c   :  { %v154_v2 = vsel %vm71_vm12, %v153_v51, %v152_v36  ;;  %v403_v12 = vor.u32 %v402_v0, %v401_v60  ;;  %v408_v14 = vshrl.u32 %v970_v3, %v396_v5  ;;  %v410_v7 = vshll.u32 %v970_v3, %v395_v21 }
  0x5d   :  { %v157_v8 = vsel %vm1114_vm14, %v997_v22, %v154_v2  ;;  %v1205_v52 = vshrl.u32 %v338_v28, 30  ;;  %v253_v45 = vand.u32 2147483647, %v252_v9  ;;  %v411_v16 = vshrl.u32 %v971_v11, %v396_v5 }
  0x5e   :  { %889 = vcosq.f32 %v157_v8  ;;  %v262_v17 = vsel %vm1181_vm8, 0, %v260_v43  ;;  %v409_v58 = vor.u32 %v408_v14, %v407_v6  ;;  %vm413_vm9 = vcmp.lt.s32.totalorder %v1190_v57, 1 }
  0x5f   :  { %891 = vsinq.f32 %v157_v8  ;;  %v340_v55 = vshll.u32 %v1205_v52, 30  ;;  %v256_v18 = vmul.f32 %v255_v54, %v253_v45  ;;  %v397_v20 = vshrl.u32 %v966_v59, %v396_v5 }
  0x60   :  { %v406_v29 = vor.u32 %v405_v4, %v404_v13  ;;  %v1217_v30 = vshll.u32 %v389_v10, 8  ;;  %vm164_vm10 = vcmp.lt.s32.totalorder %v1172_v19, 2  ;;  %v412_v32 = vor.u32 %v411_v16, %v410_v7 }
  0x61   :  { %v1220_v21 = vsub.s32 %v337_v53, %v340_v55  ;;  %vm415_vm11 = vcmp.lt.s32.totalorder %v1190_v57, 3  ;;  %vm416_vm12 = vcmp.lt.s32.totalorder %v1190_v57, 4  ;;  %vm161_vm13 = vweird.f32 %v997_v22 }
  0x62   :  { %v257_v37 = vxor.u32 2147483648, %v256_v18  ;;  %vm279_vm14 = vcmp.lt.s32.totalorder %v1001_v24, 0  ;;  %vm414_vm15 = vcmp.lt.s32.totalorder %v1190_v57, 2  ;;  %v418_v56 = vsel %vm416_vm12, %v406_v29, 2102212464 }
  0x63   :  { %v421_v10 = vsel %vm413_vm9, %v400_v49, %v403_v12  ;;  %vm165_vm0 = vcmp.eq.s32.totalorder %v1172_v19, 0  ;;  %v266_v39 = vadd.s32 3, %v262_v17  ;;  %v343_v40 = vsub.s32 0, %v1220_v21 }
  0x64   :  { %v422_v33 = vsel %vm416_vm12, %v409_v58, 920167782  ;;  %v258_v36 = vsel %vm175_vm4, %v257_v37, %v256_v18  ;;  %v417_v43 = vsel %vm413_vm9, %v397_v20, %v400_v49  ;;  %v419_v5 = vsel %vm415_vm11, %v403_v12, %v418_v56 }
  0x65   :  { %v423_v41 = vsel %vm415_vm11, %v406_v29, %v422_v33  ;;  %v261_v42 = vsel %vm1181_vm8, %v999_v23, %v258_v36  ;;  %vm1248_vm1 = vcmp.le.f32.partialorder %v277_v46, 0.7853982  ;;  %v832_v44 = vmin.u32 %v343_v40, %v1220_v21 }
  0x66   :  { %v424_v51 = vsel %vm414_vm15, %v421_v10, %v423_v41  ;;  %v425_v53 = vsel %vm413_vm9, %v403_v12, %v406_v29  ;;  %893 = vcosq.f32 %v261_v42  ;;  %v426_v35 = vsel %vm416_vm12, %v412_v32, 1326507024 }
  0x67   :  { %v1260_v34 = vmul.u32.u64.low %v1217_v30, %v424_v51  ;;  %v1261_v60 = vmul.u32.u64.high %v1217_v30, %v424_v51, %v1260_v34  ;;  %vm168_vm2 = vcmp.eq.s32.totalorder %v1172_v19, 2  ;;  %895 = vsinq.f32 %v261_v42 }
  0x68   :  { %v890_v46 = vpop.eup %889  ;;  %v345_v50 = vclz %v832_v44  ;;  %v363_v62 = vsub.s32 4, %v1205_v52  ;;  %v267_v2 = vand.u32 3, %v266_v39  ;;  %v333_v28 = vadd.s32 %v1167_v47, %v1164_v15 }
  0x69   :  { %v892_v0 = vpop.eup %891  ;;  %v169_v13 = vxor.u32 2147483648, %v890_v46  ;;  %v427_v4 = vsel %vm415_vm11, %v409_v58, %v426_v35  ;;  %v420_v9 = vsel %vm414_vm15, %v417_v43, %v419_v5  ;;  %v485_v45 = vand.u32 2147483647, %v1003_v25 }
  0x6a   :  { %v166_v6 = vxor.u32 2147483648, %v892_v0  ;;  %v833_v8 = vadd.s32 4294967294, %v345_v50  ;;  %v428_v54 = vsel %vm414_vm15, %v425_v53, %v427_v4  ;;  %vm265_vm3 = vweird.f32 %v999_v23 }
  0x6b   :  { %v170_v49 = vsel %vm168_vm2, %v169_v13, %v892_v0  ;;  %v1275_v12 = vmul.u32.u64.low %v1217_v30, %v428_v54  ;;  %v1276_v14 = vmul.u32.u64.high %v1217_v30, %v428_v54, %v1275_v12  ;;  %v364_v47 = vsel %vm279_vm14, %v363_v62, %v1205_v52 }
  0x6c   :  { %v167_v15 = vsel %vm165_vm0, %v890_v46, %v166_v6  ;;  %vm834_vm4 = vcmp.lt.s32.totalorder %v833_v8, 0  ;;  %v439_v57 = vadd.s32 1, %v1261_v60  ;;  %v436_v17 = vmul.u32 %v1217_v30, %v420_v9 }
  0x6d   :  { %v171_v7 = vsel %vm164_vm10, %v167_v15, %v170_v49  ;;  %v348_v16 = vsel %vm834_vm4, 0, %v833_v8  ;;  %v488_v55 = vand.u32 2139095040, %v1003_v25  ;;  %v366_v52 = vsel %vm1248_vm1, 0, %v364_v47 }
  0x6e   :  { %v172_v58 = vsel %vm161_vm13, nan, %v171_v7  ;;  %v349_v18 = vsub.s32 32, %v348_v16  ;;  %v350_v20 = vshll.u32 %v1220_v21, %v348_v16  ;;  %v353_v29 = vsub.s32 4294967266, %v348_v16 }
  0x6f   :  { %vm438_vm5 = vc.u32 %v1276_v14, %v1260_v34  ;;  %v489_v19 = vshrl.u32 %v488_v55, 23  ;;  %v492_v32 = vand.u32 8388607, %v485_v45  ;;  %797 = vst [vmem:[#allocation5] sm:$0xff] %v172_v58  ;;  %vm268_vm6 = vcmp.lt.s32.totalorder %v267_v2, 2 }
  0x70   :  { %v351_v30 = vshrl.u32 %v333_v28, %v349_v18  ;;  %v354_v37 = vadd.s32 127, %v353_v29  ;;  %v440_v22 = vsel %vm438_vm5, %v439_v57, %v1261_v60  ;;  %v894_v56 = vpop.eup %893  ;;  %vm269_vm7 = vcmp.eq.s32.totalorder %v267_v2, 0 }
  0x71   :  { %vm272_vm8 = vcmp.eq.s32.totalorder %v267_v2, 2  ;;  %v441_v21 = vadd.s32 %v440_v22, %v436_v17  ;;  %v839_v10 = vadd.s32 4294967169, %v489_v19  ;;  %v896_v39 = vpop.eup %895  ;;  %v273_v40 = vxor.u32 2147483648, %v894_v56 }
  0x72   :  { %v352_v33 = vor.u32 %v351_v30, %v350_v20  ;;  %v355_v36 = vshll.u32 %v354_v37, 23  ;;  %v370_v43 = vadd.s32 3, %v366_v52  ;;  %v270_v5 = vxor.u32 2147483648, %v896_v39 }
  0x73   :  { %v442_v41 = vadd.s32 536870912, %v441_v21  ;;  %v493_v42 = vor.u32 8388608, %v492_v32  ;;  %v495_v44 = vadd.s32 1, %v839_v10  ;;  %v274_v51 = vsel %vm272_vm8, %v273_v40, %v896_v39 }
  0x74   :  { %v356_v53 = vor.u32 4788187, %v355_v36  ;;  %v359_v35 = vcvt.s32.f32 %v352_v33  ;;  %v592_v46 = vand.u32 2139095040, %v1005_v26  ;;  %v271_v60 = vsel %vm269_vm7, %v894_v56, %v270_v5 }
  0x75   :  { %v443_v50 = vshrl.u32 %v442_v41, 30  ;;  %vm496_vm9 = vcmp.gt.s32.totalorder %v495_v44, 0  ;;  %v589_v62 = vand.u32 2147483647, %v1005_v26  ;;  %v275_v0 = vsel %vm268_vm6, %v271_v60, %v274_v51 }
  0x76   :  { %v357_v13 = vand.u32 2147483647, %v356_v53  ;;  %v497_v28 = vsel %vm496_vm9, %v495_v44, 0  ;;  %v276_v4 = vsel %vm265_vm3, nan, %v275_v0  ;;  %v593_v8 = vshrl.u32 %v592_v46, 23 }
  0x77   :  { %v444_v6 = vshll.u32 %v443_v50, 30  ;;  %v1306_v54 = vand.u32 3, %v370_v43  ;;  %vm383_vm10 = vcmp.lt.s32.totalorder %v1019_v48, 0  ;;  %v499_v49 = vand.u32 31, %v497_v28  ;;  %798 = vst [vmem:[#allocation5 + $0x8] sm:$0xff] %v276_v4 }
  0x78   :  { %v360_v9 = vmul.f32 %v359_v35, %v357_v13  ;;  %v437_v12 = vadd.s32 %v1260_v34, %v1276_v14  ;;  %v1313_v2 = vshll.u32 %v493_v42, 8  ;;  %v1317_v23 = vand.u32 8388607, %v589_v62 }
  0x79   :  { %v1311_v15 = vsub.s32 %v441_v21, %v444_v6  ;;  %v467_v57 = vsub.s32 4, %v443_v50  ;;  %v1319_v7 = vshrl.u32 %v497_v28, 5  ;;  %v500_v16 = vsub.s32 32, %v499_v49 }
  0x7a   :  { %v361_v47 = vxor.u32 2147483648, %v360_v9  ;;  %v502_v55 = vshll.u32 %v966_v59, %v499_v49  ;;  %v505_v58 = vshll.u32 %v967_v61, %v499_v49  ;;  %v843_v34 = vadd.s32 4294967169, %v593_v8 }
  0x7b   :  { %v447_v17 = vsub.s32 0, %v1311_v15  ;;  %v503_v18 = vshrl.u32 %v967_v61, %v500_v16  ;;  %v506_v20 = vshrl.u32 %v968_v63, %v500_v16  ;;  %v508_v29 = vshll.u32 %v968_v63, %v499_v49 }
  0x7c   :  { %v362_v14 = vsel %vm279_vm14, %v361_v47, %v360_v9  ;;  %v509_v32 = vshrl.u32 %v969_v1, %v500_v16  ;;  %v597_v30 = vor.u32 8388608, %v1317_v23  ;;  %v1337_v37 = vsel %vm383_vm10, %v467_v57, %v443_v50 }
  0x7d   :  { %v365_v52 = vsel %vm1248_vm1, %v1001_v24, %v362_v14  ;;  %v836_v19 = vmin.u32 %v447_v17, %v1311_v15  ;;  %v501_v22 = vshrl.u32 %v966_v59, %v500_v16  ;;  %v511_v56 = vshll.u32 %v969_v1, %v499_v49 }
  0x7e   :  { %897 = vcosq.f32 %v365_v52  ;;  %vm1343_vm11 = vcmp.le.f32.partialorder %v381_v38, 0.7853982  ;;  %v504_v10 = vor.u32 %v503_v18, %v502_v55  ;;  %v507_v39 = vor.u32 %v506_v20, %v505_v58 }
  0x7f   :  { %899 = vsinq.f32 %v365_v52  ;;  %v449_v21 = vclz %v836_v19  ;;  %vm376_vm12 = vcmp.eq.s32.totalorder %v1306_v54, 2  ;;  %v510_v40 = vor.u32 %v509_v32, %v508_v29 }
  0x80   :  { %v512_v33 = vshrl.u32 %v970_v3, %v500_v16  ;;  %v514_v36 = vshll.u32 %v970_v3, %v499_v49  ;;  %vm517_vm13 = vcmp.lt.s32.totalorder %v1319_v7, 1  ;;  %vm373_vm14 = vcmp.eq.s32.totalorder %v1306_v54, 0 }
  0x81   :  { %v837_v43 = vadd.s32 4294967294, %v449_v21  ;;  %v515_v38 = vshrl.u32 %v971_v11, %v500_v16  ;;  %vm518_vm15 = vcmp.lt.s32.totalorder %v1319_v7, 2  ;;  %vm520_vm0 = vcmp.lt.s32.totalorder %v1319_v7, 4 }
  0x82   :  { %vm372_vm1 = vcmp.lt.s32.totalorder %v1306_v54, 2  ;;  %v513_v5 = vor.u32 %v512_v33, %v511_v56  ;;  %vm519_vm2 = vcmp.lt.s32.totalorder %v1319_v7, 3  ;;  %v521_v41 = vsel %vm517_vm13, %v501_v22, %v504_v10 }
  0x83   :  { %v522_v42 = vsel %vm520_vm0, %v510_v40, 2102212464  ;;  %vm369_vm3 = vweird.f32 %v1001_v24  ;;  %vm838_vm4 = vcmp.lt.s32.totalorder %v837_v43, 0  ;;  %v516_v44 = vor.u32 %v515_v38, %v514_v36 }
  0x84   :  { %v523_v51 = vsel %vm519_vm2, %v507_v39, %v522_v42  ;;  %v525_v53 = vsel %vm517_vm13, %v504_v10, %v507_v39  ;;  %v452_v35 = vsel %vm838_vm4, 0, %v837_v43  ;;  %v526_v46 = vsel %vm520_vm0, %v513_v5, 920167782 }
  0x85   :  { %v529_v60 = vsel %vm517_vm13, %v507_v39, %v510_v40  ;;  %v599_v50 = vadd.s32 1, %v843_v34  ;;  %v453_v0 = vsub.s32 32, %v452_v35  ;;  %v454_v13 = vshll.u32 %v1311_v15, %v452_v35 }
  0x86   :  { %v457_v28 = vsub.s32 4294967266, %v452_v35  ;;  %v527_v4 = vsel %vm519_vm2, %v510_v40, %v526_v46  ;;  %v524_v6 = vsel %vm518_vm15, %v521_v41, %v523_v51  ;;  %v530_v9 = vsel %vm520_vm0, %v516_v44, 1326507024 }
  0x87   :  { %v528_v8 = vsel %vm518_vm15, %v525_v53, %v527_v4  ;;  %vm600_vm5 = vcmp.gt.s32.totalorder %v599_v50, 0  ;;  %v455_v49 = vshrl.u32 %v437_v12, %v453_v0  ;;  %v531_v57 = vsel %vm519_vm2, %v513_v5, %v530_v9 }
  0x88   :  { %v458_v47 = vadd.s32 127, %v457_v28  ;;  %v601_v15 = vsel %vm600_vm5, %v599_v50, 0  ;;  %v898_v16 = vpop.eup %897  ;;  %v470_v17 = vsel %vm1343_vm11, 0, %v1337_v37  ;;  %v532_v55 = vsel %vm518_vm15, %v529_v60, %v531_v57 }
  0x89   :  { %v1387_v58 = vmul.u32.u64.low %v1313_v2, %v528_v8  ;;  %v1388_v34 = vmul.u32.u64.high %v1313_v2, %v528_v8, %v1387_v58  ;;  %v900_v14 = vpop.eup %899  ;;  %v377_v12 = vxor.u32 2147483648, %v898_v16  ;;  %v456_v18 = vor.u32 %v455_v49, %v454_v13 }
  0x8a   :  { %v459_v20 = vshll.u32 %v458_v47, 23  ;;  %v603_v29 = vand.u32 31, %v601_v15  ;;  %v374_v52 = vxor.u32 2147483648, %v900_v14  ;;  %v540_v37 = vmul.u32 %v1313_v2, %v524_v6 }
  0x8b   :  { %v1392_v19 = vmul.u32.u64.low %v1313_v2, %v532_v55  ;;  %v1393_v32 = vmul.u32.u64.high %v1313_v2, %v532_v55, %v1392_v19  ;;  %v378_v7 = vsel %vm376_vm12, %v377_v12, %v900_v14  ;;  %v463_v56 = vcvt.s32.f32 %v456_v18 }
  0x8c   :  { %v460_v22 = vor.u32 4788187, %v459_v20  ;;  %v604_v21 = vsub.s32 32, %v603_v29  ;;  %v375_v10 = vsel %vm373_vm14, %v898_v16, %v374_v52  ;;  %v543_v39 = vadd.s32 1, %v1388_v34 }
  0x8d   :  { %v606_v40 = vshll.u32 %v966_v59, %v603_v29  ;;  %v609_v33 = vshll.u32 %v967_v61, %v603_v29  ;;  %v379_v36 = vsel %vm372_vm1, %v375_v10, %v378_v7  ;;  %v474_v2 = vadd.s32 3, %v470_v17 }
  0x8e   :  { %v461_v43 = vand.u32 2147483647, %v460_v22  ;;  %v607_v38 = vshrl.u32 %v967_v61, %v604_v21  ;;  %v380_v5 = vsel %vm369_vm3, nan, %v379_v36  ;;  %vm542_vm6 = vc.u32 %v1393_v32, %v1387_v58 }
  0x8f   :  { %v602_v41 = vshrl.u32 %v601_v15, 5  ;;  %v610_v42 = vshrl.u32 %v968_v63, %v604_v21  ;;  %v544_v51 = vsel %vm542_vm6, %v543_v39, %v1388_v34  ;;  %v612_v54 = vshll.u32 %v968_v63, %v603_v29  ;;  %799 = vst [vmem:[#allocation5 + $0x10] sm:$0xff] %v380_v5 }
  0x90   :  { %v464_v44 = vmul.f32 %v463_v56, %v461_v43  ;;  %v608_v53 = vor.u32 %v607_v38, %v606_v40  ;;  %v545_v35 = vadd.s32 %v544_v51, %v540_v37  ;;  %v613_v60 = vshrl.u32 %v969_v1, %v604_v21 }
  0x91   :  { %v611_v46 = vor.u32 %v610_v42, %v609_v33  ;;  %v615_v24 = vshll.u32 %v969_v1, %v603_v29  ;;  %v616_v0 = vshrl.u32 %v970_v3, %v604_v21  ;;  %v618_v13 = vshll.u32 %v970_v3, %v603_v29 }
  0x92   :  { %v465_v50 = vxor.u32 2147483648, %v464_v44  ;;  %v619_v28 = vshrl.u32 %v971_v11, %v604_v21  ;;  %v546_v4 = vadd.s32 536870912, %v545_v35  ;;  %v605_v6 = vshrl.u32 %v966_v59, %v604_v21 }
  0x93   :  { %v614_v8 = vor.u32 %v613_v60, %v612_v54  ;;  %vm621_vm7 = vcmp.lt.s32.totalorder %v602_v41, 1  ;;  %v617_v49 = vor.u32 %v616_v0, %v615_v24  ;;  %vm624_vm8 = vcmp.lt.s32.totalorder %v602_v41, 4 }
  0x94   :  { %v466_v9 = vsel %vm383_vm10, %v465_v50, %v464_v44  ;;  %v620_v47 = vor.u32 %v619_v28, %v618_v13  ;;  %v1424_v15 = vshrl.u32 %v546_v4, 30  ;;  %vm623_vm9 = vcmp.lt.s32.totalorder %v602_v41, 3 }
  0x95   :  { %v469_v57 = vsel %vm1343_vm11, %v1019_v48, %v466_v9  ;;  %v626_v16 = vsel %vm624_vm8, %v614_v8, 2102212464  ;;  %vm622_vm12 = vcmp.lt.s32.totalorder %v602_v41, 2  ;;  %v629_v17 = vsel %vm621_vm7, %v608_v53, %v611_v46 }
  0x96   :  { %901 = vcosq.f32 %v469_v57  ;;  %v630_v55 = vsel %vm624_vm8, %v617_v49, 920167782  ;;  %v548_v34 = vshll.u32 %v1424_v15, 30  ;;  %v625_v14 = vsel %vm621_vm7, %v605_v6, %v608_v53 }
  0x97   :  { %903 = vsinq.f32 %v469_v57  ;;  %v627_v12 = vsel %vm623_vm9, %v611_v46, %v626_v16  ;;  %v631_v18 = vsel %vm623_vm9, %v614_v8, %v630_v55  ;;  %v633_v31 = vsel %vm621_vm7, %v611_v46, %v614_v8 }
  0x98   :  { %v634_v20 = vsel %vm624_vm8, %v620_v47, 1326507024  ;;  %v637_v29 = vshll.u32 %v597_v30, 8  ;;  %v549_v52 = vsub.s32 %v545_v35, %v548_v34  ;;  %v632_v19 = vsel %vm622_vm12, %v629_v17, %v631_v18 }
  0x99   :  { %v635_v37 = vsel %vm623_vm9, %v617_v49, %v634_v20  ;;  %v628_v10 = vsel %vm622_vm12, %v625_v14, %v627_v12  ;;  %v475_v33 = vand.u32 3, %v474_v2  ;;  %v696_v30 = vand.u32 2139095040, %v1007_v27 }
  0x9a   :  { %v636_v7 = vsel %vm622_vm12, %v633_v31, %v635_v37  ;;  %v1437_v22 = vmul.u32.u64.low %v637_v29, %v632_v19  ;;  %v1438_v56 = vmul.u32.u64.high %v637_v29, %v632_v19, %v1437_v22  ;;  %v551_v21 = vsub.s32 0, %v549_v52 }
  0x9b   :  { %v1442_v39 = vmul.u32.u64.low %v637_v29, %v636_v7  ;;  %v1443_v40 = vmul.u32.u64.high %v637_v29, %v636_v7, %v1442_v39  ;;  %v644_v36 = vmul.u32 %v637_v29, %v628_v10  ;;  %vm473_vm10 = vweird.f32 %v1019_v48 }
  0x9c   :  { %v840_v23 = vmin.u32 %v551_v21, %v549_v52  ;;  %v647_v43 = vadd.s32 1, %v1438_v56  ;;  %vm476_vm11 = vcmp.lt.s32.totalorder %v475_v33, 2  ;;  %vm480_vm13 = vcmp.eq.s32.totalorder %v475_v33, 2 }
  0x9d   :  { %vm646_vm14 = vc.u32 %v1443_v40, %v1437_v22  ;;  %v697_v41 = vshrl.u32 %v696_v30, 23  ;;  %vm477_vm15 = vcmp.eq.s32.totalorder %v475_v33, 0  ;;  %v541_v54 = vadd.s32 %v1387_v58, %v1393_v32 }
  0x9e   :  { %v553_v38 = vclz %v840_v23  ;;  %v648_v51 = vsel %vm646_vm14, %v647_v43, %v1438_v56  ;;  %v571_v24 = vsub.s32 4, %v1424_v15  ;;  %v693_v50 = vand.u32 2147483647, %v1007_v27 }
  0x9f   :  { %v649_v35 = vadd.s32 %v648_v51, %v644_v36  ;;  %v847_v46 = vadd.s32 4294967169, %v697_v41  ;;  %vm487_vm1 = vcmp.lt.s32.totalorder %v1003_v25, 0  ;;  %vm1469_vm3 = vcmp.le.f32.partialorder %v485_v45, 0.7853982 }
  0xa0   :  { %v902_v5 = vpop.eup %901  ;;  %v841_v2 = vadd.s32 4294967294, %v553_v38  ;;  %v700_v16 = vand.u32 8388607, %v693_v50  ;;  %v572_v55 = vsel %vm487_vm1, %v571_v24, %v1424_v15  ;;  %v645_v23 = vadd.s32 %v1437_v22, %v1443_v40 }
  0xa1   :  { %v904_v42 = vpop.eup %903  ;;  %v481_v44 = vxor.u32 2147483648, %v902_v5  ;;  %v650_v28 = vadd.s32 536870912, %v649_v35  ;;  %v703_v4 = vadd.s32 1, %v847_v46  ;;  %v574_v19 = vsel %vm1469_vm3, 0, %v572_v55 }
  0xa2   :  { %v478_v53 = vxor.u32 2147483648, %v904_v42  ;;  %vm842_vm0 = vcmp.lt.s32.totalorder %v841_v2, 0  ;;  %v701_v37 = vor.u32 8388608, %v700_v16  ;;  %vm577_vm12 = vweird.f32 %v1003_v25 }
  0xa3   :  { %v482_v60 = vsel %vm480_vm13, %v481_v44, %v904_v42  ;;  %v556_v13 = vsel %vm842_vm0, 0, %v841_v2  ;;  %v1459_v32 = vshrl.u32 %v650_v28, 30  ;;  %vm704_vm2 = vcmp.gt.s32.totalorder %v703_v4, 0 }
  0xa4   :  { %v479_v0 = vsel %vm477_vm15, %v902_v5, %v478_v53  ;;  %v557_v8 = vsub.s32 32, %v556_v13  ;;  %v558_v9 = vshll.u32 %v549_v52, %v556_v13  ;;  %v561_v49 = vsub.s32 4294967266, %v556_v13 }
  0xa5   :  { %v483_v6 = vsel %vm476_vm11, %v479_v0, %v482_v60  ;;  %v705_v17 = vsel %vm704_vm2, %v703_v4, 0  ;;  %v652_v34 = vshll.u32 %v1459_v32, 30  ;;  %vm1518_vm14 = vcmp.le.f32.partialorder %v589_v62, 0.7853982 }
  0xa6   :  { %v484_v58 = vsel %vm473_vm10, nan, %v483_v6  ;;  %v559_v47 = vshrl.u32 %v541_v54, %v557_v8  ;;  %v562_v57 = vadd.s32 127, %v561_v49  ;;  %v707_v48 = vand.u32 31, %v705_v17 }
  0xa7   :  { %800 = vst [vmem:[#allocation5 + $0x18] sm:$0xff] %v484_v58  ;;  %v653_v31 = vsub.s32 %v649_v35, %v652_v34  ;;  %v706_v36 = vshrl.u32 %v705_v17, 5  ;;  %v578_v6 = vadd.s32 3, %v574_v19  ;;  %vm591_vm15 = vcmp.lt.s32.totalorder %v1005_v26, 0 }
  0xa8   :  { %v560_v14 = vor.u32 %v559_v47, %v558_v9  ;;  %v563_v12 = vshll.u32 %v562_v57, 23  ;;  %v708_v20 = vsub.s32 32, %v707_v48  ;;  %v710_v7 = vshll.u32 %v966_v59, %v707_v48 }
  0xa9   :  { %v655_v15 = vsub.s32 0, %v653_v31  ;;  %v713_v21 = vshll.u32 %v967_v61, %v707_v48  ;;  %v716_v39 = vshll.u32 %v968_v63, %v707_v48  ;;  %v719_v43 = vshll.u32 %v969_v1, %v707_v48 }
  0xaa   :  { %v564_v29 = vor.u32 4788187, %v563_v12  ;;  %v567_v52 = vcvt.s32.f32 %v560_v14  ;;  %v711_v56 = vshrl.u32 %v967_v61, %v708_v20  ;;  %v714_v45 = vshrl.u32 %v968_v63, %v708_v20 }
  0xab   :  { %v717_v33 = vshrl.u32 %v969_v1, %v708_v20  ;;  %v844_v30 = vmin.u32 %v655_v15, %v653_v31  ;;  %v709_v5 = vshrl.u32 %v966_v59, %v708_v20  ;;  %v720_v41 = vshrl.u32 %v970_v3, %v708_v20 }
  0xac   :  { %v565_v10 = vand.u32 2147483647, %v564_v29  ;;  %v741_v61 = vshll.u32 %v701_v37, 8  ;;  %v712_v44 = vor.u32 %v711_v56, %v710_v7  ;;  %v715_v2 = vor.u32 %v714_v45, %v713_v21 }
  0xad   :  { %v657_v42 = vclz %v844_v30  ;;  %v718_v51 = vor.u32 %v717_v33, %v716_v39  ;;  %v721_v53 = vor.u32 %v720_v41, %v719_v43  ;;  %v722_v54 = vshll.u32 %v970_v3, %v707_v48 }
  0xae   :  { %v568_v38 = vmul.f32 %v567_v52, %v565_v10  ;;  %v723_v22 = vshrl.u32 %v971_v11, %v708_v20  ;;  %vm725_vm4 = vcmp.lt.s32.totalorder %v706_v36, 1  ;;  %vm726_vm5 = vcmp.lt.s32.totalorder %v706_v36, 2 }
  0xaf   :  { %v845_v40 = vadd.s32 4294967294, %v657_v42  ;;  %vm727_vm6 = vcmp.lt.s32.totalorder %v706_v36, 3  ;;  %vm728_vm7 = vcmp.lt.s32.totalorder %v706_v36, 4  ;;  %v729_v35 = vsel %vm725_vm4, %v709_v5, %v712_v44 }
  0xb0   :  { %v569_v63 = vxor.u32 2147483648, %v568_v38  ;;  %v724_v1 = vor.u32 %v723_v22, %v722_v54  ;;  %v730_v3 = vsel %vm728_vm7, %v718_v51, 2102212464  ;;  %v733_v11 = vsel %vm725_vm4, %v712_v44, %v715_v2 }
  0xb1   :  { %vm846_vm8 = vcmp.lt.s32.totalorder %v845_v40, 0  ;;  %v731_v24 = vsel %vm727_vm6, %v715_v2, %v730_v3  ;;  %v734_v0 = vsel %vm728_vm7, %v721_v53, 920167782  ;;  %v737_v9 = vsel %vm725_vm4, %v715_v2, %v718_v51 }
  0xb2   :  { %v570_v59 = vsel %vm487_vm1, %v569_v63, %v568_v38  ;;  %v660_v60 = vsel %vm846_vm8, 0, %v845_v40  ;;  %v735_v8 = vsel %vm727_vm6, %v718_v51, %v734_v0  ;;  %v738_v49 = vsel %vm728_vm7, %v724_v1, 1326507024 }
  0xb3   :  { %v573_v46 = vsel %vm1469_vm3, %v1003_v25, %v570_v59  ;;  %v661_v13 = vsub.s32 32, %v660_v60  ;;  %v662_v28 = vshll.u32 %v653_v31, %v660_v60  ;;  %v665_v4 = vsub.s32 4294967266, %v660_v60 }
  0xb4   :  { %905 = vcosq.f32 %v573_v46  ;;  %v736_v57 = vsel %vm726_vm5, %v733_v11, %v735_v8  ;;  %v739_v16 = vsel %vm727_vm6, %v721_v53, %v738_v49  ;;  %v732_v17 = vsel %vm726_vm5, %v729_v35, %v731_v24 }
  0xb5   :  { %907 = vsinq.f32 %v573_v46  ;;  %v663_v58 = vshrl.u32 %v645_v23, %v661_v13  ;;  %v666_v47 = vadd.s32 127, %v665_v4  ;;  %v740_v55 = vsel %vm726_vm5, %v737_v9, %v739_v16 }
  0xb6   :  { %v1505_v34 = vmul.u32.u64.low %v741_v61, %v736_v57  ;;  %v1506_v48 = vmul.u32.u64.high %v741_v61, %v736_v57, %v1505_v34  ;;  %v1508_v18 = vmul.u32.u64.low %v741_v61, %v740_v55  ;;  %v1509_v31 = vmul.u32.u64.high %v741_v61, %v740_v55, %v1508_v18 }
  0xb7   :  { %v664_v14 = vor.u32 %v663_v58, %v662_v28  ;;  %v667_v12 = vshll.u32 %v666_v47, 23  ;;  %v579_v20 = vand.u32 3, %v578_v6  ;;  %v748_v19 = vmul.u32 %v741_v61, %v732_v17 }
  0xb8   :  { %v751_v37 = vadd.s32 1, %v1506_v48  ;;  %v675_v7 = vsub.s32 4, %v1459_v32  ;;  %vm750_vm9 = vc.u32 %v1509_v31, %v1505_v34  ;;  %v749_v11 = vadd.s32 %v1505_v34, %v1509_v31 }
  0xb9   :  { %v668_v29 = vor.u32 4788187, %v667_v12  ;;  %v671_v52 = vcvt.s32.f32 %v664_v14  ;;  %vm584_vm10 = vcmp.eq.s32.totalorder %v579_v20, 2  ;;  %vm581_vm11 = vcmp.eq.s32.totalorder %v579_v20, 0 }
  0xba   :  { %v752_v21 = vsel %vm750_vm9, %v751_v37, %v1506_v48  ;;  %vm580_vm13 = vcmp.lt.s32.totalorder %v579_v20, 2  ;;  %v676_v38 = vsel %vm591_vm15, %v675_v7, %v1459_v32  ;;  %vm681_vm4 = vweird.f32 %v1005_v26 }
  0xbb   :  { %v669_v15 = vand.u32 2147483647, %v668_v29  ;;  %v753_v33 = vadd.s32 %v752_v21, %v748_v19  ;;  %v678_v51 = vsel %vm1518_vm14, 0, %v676_v38  ;;  %vm695_vm5 = vcmp.lt.s32.totalorder %v1007_v27, 0 }
  0xbc   :  { %v682_v32 = vadd.s32 3, %v678_v51  ;;  %vm694_vm6 = vcmp.le.f32.partialorder %v693_v50, 0.7853982 }
  0xbd   :  { %v672_v39 = vmul.f32 %v671_v52, %v669_v15  ;;  %v754_v5 = vadd.s32 536870912, %v753_v33 }
  0xbe   :  { %v906_v56 = vpop.eup %905  ;;  %v683_v22 = vand.u32 3, %v682_v32 }
  0xbf   :  { %v908_v10 = vpop.eup %907  ;;  %v585_v45 = vxor.u32 2147483648, %v906_v56  ;;  %v673_v43 = vxor.u32 2147483648, %v672_v39  ;;  %v755_v44 = vshrl.u32 %v754_v5, 30 }
  0xc0   :  { %v582_v23 = vxor.u32 2147483648, %v908_v10  ;;  %vm688_vm0 = vcmp.eq.s32.totalorder %v683_v22, 2  ;;  %vm685_vm1 = vcmp.eq.s32.totalorder %v683_v22, 0  ;;  %vm684_vm2 = vcmp.lt.s32.totalorder %v683_v22, 2 }
  0xc1   :  { %v586_v36 = vsel %vm584_vm10, %v585_v45, %v908_v10  ;;  %v674_v42 = vsel %vm591_vm15, %v673_v43, %v672_v39  ;;  %v756_v63 = vshll.u32 %v755_v44, 30  ;;  %v779_v55 = vsub.s32 4, %v755_v44 }
  0xc2   :  { %v583_v41 = vsel %vm581_vm11, %v906_v56, %v582_v23  ;;  %v677_v62 = vsel %vm1518_vm14, %v1005_v26, %v674_v42 }
  0xc3   :  { %v587_v61 = vsel %vm580_vm13, %v583_v41, %v586_v36  ;;  %909 = vcosq.f32 %v677_v62  ;;  %v757_v53 = vsub.s32 %v753_v33, %v756_v63  ;;  %v780_v48 = vsel %vm695_vm5, %v779_v55, %v755_v44 }
  0xc4   :  { %v588_v2 = vsel %vm577_vm12, nan, %v587_v61  ;;  %911 = vsinq.f32 %v677_v62  ;;  %v782_v18 = vsel %vm694_vm6, 0, %v780_v48  ;;  %vm785_vm12 = vweird.f32 %v1007_v27 }
  0xc5   :  { %801 = vst [vmem:[#allocation5 + $0x20] sm:$0xff] %v588_v2  ;;  %v759_v54 = vsub.s32 0, %v757_v53  ;;  %v786_v31 = vadd.s32 3, %v782_v18 }
  0xc7   :  { %v848_v40 = vmin.u32 %v759_v54, %v757_v53  ;;  %v787_v20 = vand.u32 3, %v786_v31 }
  0xc9   :  { %v761_v59 = vclz %v848_v40  ;;  %vm792_vm7 = vcmp.eq.s32.totalorder %v787_v20, 2  ;;  %vm789_vm8 = vcmp.eq.s32.totalorder %v787_v20, 0  ;;  %vm788_vm9 = vcmp.lt.s32.totalorder %v787_v20, 2 }
  0xcb   :  { %v849_v25 = vadd.s32 4294967294, %v761_v59 }
  0xcd   :  { %v910_v1 = vpop.eup %909  ;;  %vm850_vm3 = vcmp.lt.s32.totalorder %v849_v25, 0 }
  0xce   :  { %v912_v35 = vpop.eup %911  ;;  %v689_v46 = vxor.u32 2147483648, %v910_v1  ;;  %v764_v24 = vsel %vm850_vm3, 0, %v849_v25 }
  0xcf   :  { %v686_v3 = vxor.u32 2147483648, %v912_v35  ;;  %v765_v13 = vsub.s32 32, %v764_v24  ;;  %v766_v28 = vshll.u32 %v757_v53, %v764_v24  ;;  %v769_v4 = vsub.s32 4294967266, %v764_v24 }
  0xd0   :  { %v690_v60 = vsel %vm688_vm0, %v689_v46, %v912_v35 }
  0xd1   :  { %v687_v0 = vsel %vm685_vm1, %v910_v1, %v686_v3  ;;  %v767_v9 = vshrl.u32 %v749_v11, %v765_v13  ;;  %v770_v49 = vadd.s32 127, %v769_v4 }
  0xd2   :  { %v691_v6 = vsel %vm684_vm2, %v687_v0, %v690_v60 }
  0xd3   :  { %v692_v8 = vsel %vm681_vm4, nan, %v691_v6  ;;  %v768_v58 = vor.u32 %v767_v9, %v766_v28  ;;  %v771_v47 = vshll.u32 %v770_v49, 23 }
  0xd4   :  { %802 = vst [vmem:[#allocation5 + $0x28] sm:$0xff] %v692_v8 }
  0xd5   :  { %v772_v57 = vor.u32 4788187, %v771_v47  ;;  %v775_v16 = vcvt.s32.f32 %v768_v58 }
  0xd7   :  { %v773_v17 = vand.u32 2147483647, %v772_v57 }
  0xd9   :  { %v776_v34 = vmul.f32 %v775_v16, %v773_v17 }
  0xdb   :  { %v777_v26 = vxor.u32 2147483648, %v776_v34 }
  0xdd   :  { %v778_v14 = vsel %vm695_vm5, %v777_v26, %v776_v34 }
  0xde   :  { %v781_v12 = vsel %vm694_vm6, %v1007_v27, %v778_v14 }
  0xdf   :  { %913 = vcosq.f32 %v781_v12 }
  0xe0   :  { %915 = vsinq.f32 %v781_v12 }
  0xe9   :  { %v914_v29 = vpop.eup %913 }
  0xea   :  { %v916_v52 = vpop.eup %915  ;;  %v793_v19 = vxor.u32 2147483648, %v914_v29 }
  0xeb   :  { %v790_v37 = vxor.u32 2147483648, %v916_v52 }
  0xec   :  { %v794_v50 = vsel %vm792_vm7, %v793_v19, %v916_v52 }
  0xed   :  { %v791_v15 = vsel %vm789_vm8, %v914_v29, %v790_v37 }
  0xee   :  { %v795_v7 = vsel %vm788_vm9, %v791_v15, %v794_v50 }
  0xef   :  { %v796_v56 = vsel %vm785_vm12, nan, %v795_v7 }
  0xf0   :  { %803 = vst [vmem:[#allocation5 + $0x30] sm:$0x3] %v796_v56 }
  0xf1   :  { %950 = shalt.err (!%p947_p12)
}
  0xf2   :  { %s951_s22 = scalar_lea.hbm %s1551_s1, 896 }
  0xf3   :  { %p952_p13 = scmp.ne.s32.totalorder %s1551_s1, %s951_s22  ;;  %p955_p0 = scmp.lt.u32.totalorder %s951_s22, %s1551_s1 }
  0xf5   :  { %p957_p1 = pnand %p955_p0, %p952_p13 }
  0xf7   :  { %960 = shalt.err (!%p957_p1)
}
  0xf8   :  { %s973_s27 = smov 128   ;;  %s974_s28 = smov 8  }
  0xf9   :  { %815 = dma.vmem_to_hbm [thread:$0]  %s810_s18, 896, %s1551_s1, [#allocation4], %s973_s27, %s973_s27, %s974_s28  }
  0xfa   :  { %963 = dma.done.wait [#allocation4], 896  }
  0xfb   :  { %964 = vsyncadd [#allocation4], 4294966400 }
  0xfc   :  { %819 = vsyncpa [#allocation3], 1 }
  0xfd   :  { %820 = vsyncpa [#allocation4], 1 }

</bundles_post_ra>
